<compile_context>
chip_gen: v7x
topology: tpu7x:2x2x1
jax: 0.10.0
libtpu: 0.0.40
codegen_flags: <defaults>
</compile_context>

<pallas_src>
import jax
import jax.numpy as jnp
from jax.experimental import pallas as pl
from jax.experimental.pallas import tpu as pltpu

HPAD = 128  # padded hidden width (64 -> 128, 32 -> 128)


def _round_up(n, m):
    return ((n + m - 1) // m) * m


def mlp_kernel(x_ref, w1_ref, b1_ref, w2_ref, b2_ref, w3_ref, b3_ref, o_ref):
    # x: (BM, input_dim) in its streamed dtype; cast in-kernel to the weight
    # dtype (no-op for f32, free VPU op for bf16) so the MXU gets a uniform
    # bf16xbf16 or f32xf32 matmul.
    x = x_ref[...].astype(w1_ref.dtype)
    h1 = jnp.dot(x, w1_ref[...], preferred_element_type=jnp.float32) + b1_ref[...]
    h1 = jnp.maximum(h1, 0.0)                                   # (BM, 128) f32
    h2 = jnp.dot(h1.astype(w2_ref.dtype), w2_ref[...],
                 preferred_element_type=jnp.float32) + b2_ref[...]
    h2 = jnp.maximum(h2, 0.0)                                   # (BM, 128) f32
    # Final Linear(32 -> 1): NT matmul so the result is lane-dense along the
    # batch (1, BM) instead of a lane-sparse (BM, 1) masked store.
    h3 = jax.lax.dot_general(
        w3_ref[...], h2.astype(w3_ref.dtype),
        dimension_numbers=(((1,), (1,)), ((), ())),
        preferred_element_type=jnp.float32)                     # (1, BM)
    h3 = jnp.maximum(h3 + b3_ref[...], 0.0)
    o_ref[...] = h3.reshape(o_ref.shape).astype(o_ref.dtype)    # (1, 1, BM)


def prepare_params(params, compute_dtype=jnp.float32):
    """One-time prep: transpose to (in, out) and zero-pad hidden dims to 128."""
    w1, b1 = params["w1"], params["b1"]   # (64, in), (64,)
    w2, b2 = params["w2"], params["b2"]   # (32, 64), (32,)
    w3, b3 = params["w3"], params["b3"]   # (1, 32),  (1,)
    input_dim = w1.shape[1]
    w1p = jnp.zeros((input_dim, HPAD), jnp.float32).at[:, :64].set(w1.T)
    b1p = jnp.zeros((1, HPAD), jnp.float32).at[:, :64].set(b1)
    w2p = jnp.zeros((HPAD, HPAD), jnp.float32).at[:64, :32].set(w2.T)
    b2p = jnp.zeros((1, HPAD), jnp.float32).at[:, :32].set(b2)
    w3p = jnp.zeros((1, HPAD), jnp.float32).at[:, :32].set(w3[0])
    b3p = b3.reshape(1, 1).astype(jnp.float32)
    return {
        "w1": w1p.astype(compute_dtype), "b1": b1p,
        "w2": w2p.astype(compute_dtype), "b2": b2p,
        "w3": w3p.astype(compute_dtype), "b3": b3p,
    }


def neural_network_forward(x, prepared, *, block_m=2048):
    """x: (B, input_dim). prepared: output of prepare_params()."""
    B, input_dim = x.shape
    w1, b1 = prepared["w1"], prepared["b1"]
    w2, b2 = prepared["w2"], prepared["b2"]
    w3, b3 = prepared["w3"], prepared["b3"]

    # Batch tile: big (amortize ~0.35us/step overhead) but capped so the
    # double-buffered, lane-padded x tile stays within a modest VMEM budget.
    x_itemsize = jnp.dtype(x.dtype).itemsize
    lane_padded = _round_up(max(input_dim, 1), 128)
    vmem_budget = 8 << 20
    cap = max(128, (vmem_budget // (2 * lane_padded * x_itemsize)) // 128 * 128)
    bm = min(_round_up(max(block_m, 1), 128), _round_up(max(B, 1), 128), cap)

    B_pad = _round_up(B, bm)
    xp = x if B_pad == B else jnp.pad(x, ((0, B_pad - B), (0, 0)))
    nb = B_pad // bm

    # Weights/biases: full-array blocks, constant index map -> VMEM-resident.
    const = lambda a: pl.BlockSpec(a.shape, lambda i, _n=a.ndim: (0,) * _n)

    weight_bytes = sum(int(a.size) * a.dtype.itemsize
                       for a in (w1, b1, w2, b2, w3, b3))
    cost = pl.CostEstimate(
        flops=2 * B_pad * (input_dim * HPAD + HPAD * HPAD + HPAD),
        transcendentals=0,
        bytes_accessed=int(xp.size) * x_itemsize + B_pad * 4 + weight_bytes,
    )

    out3 = pl.pallas_call(
        mlp_kernel,
        out_shape=jax.ShapeDtypeStruct((nb, 1, bm), jnp.float32),
        grid=(nb,),
        in_specs=[
            pl.BlockSpec((bm, input_dim), lambda i: (i, 0)),    # streamed x
            const(w1), const(b1), const(w2), const(b2), const(w3), const(b3),
        ],
        out_specs=pl.BlockSpec((1, 1, bm), lambda i: (i, 0, 0)),  # lane-dense
        compiler_params=pltpu.CompilerParams(
            dimension_semantics=("parallel",)),
        cost_estimate=cost,
    )(xp, w1, b1, w2, b2, w3, b3)

    return out3.reshape(B_pad, 1)[:B, :]


def init_params(key, input_dim):
    """Deterministic init matching the PyTorch module's parameter shapes."""
    ks = jax.random.split(key, 6)

    def uniform(k, shape, fan_in):
        bound = 1.0 / jnp.sqrt(fan_in)
        return jax.random.uniform(k, shape, jnp.float32, -bound, bound)

    return {
        "w1": uniform(ks[0], (64, input_dim), input_dim),
        "b1": uniform(ks[1], (64,), input_dim),
        "w2": uniform(ks[2], (32, 64), 64),
        "b2": uniform(ks[3], (32,), 64),
        "w3": uniform(ks[4], (1, 32), 32),
        "b3": uniform(ks[5], (1,), 32),
    }


if __name__ == "__main__":
    key = jax.random.PRNGKey(0)
    k_x, k_p = jax.random.split(key)

    batch, input_dim = 8, 16
    x = jax.random.normal(k_x, (batch, input_dim), jnp.float32)
    params = init_params(k_p, input_dim)

    # Reference in plain JAX (same semantics as the PyTorch module).
    def ref(x, p):
        h = jnp.maximum(x @ p["w1"].T + p["b1"], 0.0)
        h = jnp.maximum(h @ p["w2"].T + p["b2"], 0.0)
        return jnp.maximum(h @ p["w3"].T + p["b3"], 0.0)

    expected = ref(x, params)

    # f32 path: numerically matches the reference tightly.
    prep_f32 = prepare_params(params, jnp.float32)
    out = jax.block_until_ready(neural_network_forward(x, prep_f32))
    assert out.shape == (batch, 1)
    assert jnp.allclose(out, expected, atol=1e-5, rtol=1e-5)

    # bf16 weight path (bf16 MXU on all chips); x cast in-kernel, acc stays f32.
    prep_bf16 = prepare_params(params, jnp.bfloat16)
    out_bf16 = jax.block_until_ready(neural_network_forward(x, prep_bf16))
    assert out_bf16.shape == (batch, 1)
    assert jnp.allclose(out_bf16, expected, atol=5e-2, rtol=5e-2)

    print("KERNEL_OK")
</pallas_src>

<mosaic_0001>
module attributes {stable_mosaic.version = 11 : i64} {
  func.func @mlp_kernel(%arg0: i32, %arg1: memref<128x16xf32, #tpu.memory_space<vmem>>, %arg2: memref<16x128xf32, #tpu.memory_space<vmem>>, %arg3: memref<1x128xf32, #tpu.memory_space<vmem>>, %arg4: memref<128x128xf32, #tpu.memory_space<vmem>>, %arg5: memref<1x128xf32, #tpu.memory_space<vmem>>, %arg6: memref<1x128xf32, #tpu.memory_space<vmem>>, %arg7: memref<1x1xf32, #tpu.memory_space<vmem>>, %arg8: memref<1x1x128xf32, #tpu.memory_space<vmem>>) attributes {dimension_semantics = [#tpu.dimension_semantics<parallel>], iteration_bounds = array<i64: 1>, scalar_prefetch = 0 : i64, scratch_operands = 0 : i64, tpu.core_type = #tpu.core_type<tc>, window_params = [{transform_indices = @transform_0, window_bounds = array<i64: 128, 16>}, {pipeline_mode = #tpu.pipeline_mode<synchronous>, transform_indices = @transform_1, window_bounds = array<i64: 16, 128>}, {pipeline_mode = #tpu.pipeline_mode<synchronous>, transform_indices = @transform_2, window_bounds = array<i64: 1, 128>}, {pipeline_mode = #tpu.pipeline_mode<synchronous>, transform_indices = @transform_3, window_bounds = array<i64: 128, 128>}, {pipeline_mode = #tpu.pipeline_mode<synchronous>, transform_indices = @transform_4, window_bounds = array<i64: 1, 128>}, {pipeline_mode = #tpu.pipeline_mode<synchronous>, transform_indices = @transform_5, window_bounds = array<i64: 1, 128>}, {pipeline_mode = #tpu.pipeline_mode<synchronous>, transform_indices = @transform_6, window_bounds = array<i64: 1, 1>}, {transform_indices = @transform_7, window_bounds = array<i64: 1, 1, 128>}]} {
    %c0 = arith.constant 0 : index
    %c0_0 = arith.constant 0 : index
    %0 = vector.load %arg1[%c0, %c0_0] : memref<128x16xf32, #tpu.memory_space<vmem>>, vector<128x16xf32>
    %c0_1 = arith.constant 0 : index
    %c0_2 = arith.constant 0 : index
    %1 = vector.load %arg2[%c0_1, %c0_2] : memref<16x128xf32, #tpu.memory_space<vmem>>, vector<16x128xf32>
    %cst = arith.constant dense<0.000000e+00> : vector<128x128xf32>
    %2 = tpu.matmul %0, %1, %cst {dimension_numbers = #tpu.dot_dimension_numbers<[1], [0], [0], [1], [0, 0, 1, 1], [], []>} : vector<128x16xf32>, vector<16x128xf32>, vector<128x128xf32> -> vector<128x128xf32>
    %c0_3 = arith.constant 0 : index
    %c0_4 = arith.constant 0 : index
    %3 = vector.load %arg3[%c0_3, %c0_4] : memref<1x128xf32, #tpu.memory_space<vmem>>, vector<1x128xf32>
    %4 = vector.broadcast %3 : vector<1x128xf32> to vector<128x128xf32>
    %5 = arith.addf %2, %4 : vector<128x128xf32>
    %cst_5 = arith.constant 0.000000e+00 : f32
    %6 = vector.broadcast %cst_5 : f32 to vector<128x128xf32>
    %7 = arith.maximumf %5, %6 : vector<128x128xf32>
    %c0_6 = arith.constant 0 : index
    %c0_7 = arith.constant 0 : index
    %8 = vector.load %arg4[%c0_6, %c0_7] : memref<128x128xf32, #tpu.memory_space<vmem>>, vector<128x128xf32>
    %cst_8 = arith.constant dense<0.000000e+00> : vector<128x128xf32>
    %9 = tpu.matmul %7, %8, %cst_8 {dimension_numbers = #tpu.dot_dimension_numbers<[1], [0], [0], [1], [0, 0, 1, 1], [], []>} : vector<128x128xf32>, vector<128x128xf32>, vector<128x128xf32> -> vector<128x128xf32>
    %c0_9 = arith.constant 0 : index
    %c0_10 = arith.constant 0 : index
    %10 = vector.load %arg5[%c0_9, %c0_10] : memref<1x128xf32, #tpu.memory_space<vmem>>, vector<1x128xf32>
    %11 = vector.broadcast %10 : vector<1x128xf32> to vector<128x128xf32>
    %12 = arith.addf %9, %11 : vector<128x128xf32>
    %cst_11 = arith.constant 0.000000e+00 : f32
    %13 = vector.broadcast %cst_11 : f32 to vector<128x128xf32>
    %14 = arith.maximumf %12, %13 : vector<128x128xf32>
    %c0_12 = arith.constant 0 : index
    %c0_13 = arith.constant 0 : index
    %15 = vector.load %arg6[%c0_12, %c0_13] : memref<1x128xf32, #tpu.memory_space<vmem>>, vector<1x128xf32>
    %cst_14 = arith.constant dense<0.000000e+00> : vector<1x128xf32>
    %16 = tpu.matmul %15, %14, %cst_14 {dimension_numbers = #tpu.dot_dimension_numbers<[1], [1], [0], [0], [0, 0, 1, 0], [], []>} : vector<1x128xf32>, vector<128x128xf32>, vector<1x128xf32> -> vector<1x128xf32>
    %c0_15 = arith.constant 0 : index
    %c0_16 = arith.constant 0 : index
    %17 = vector.load %arg7[%c0_15, %c0_16] : memref<1x1xf32, #tpu.memory_space<vmem>>, vector<1x1xf32>
    %18 = vector.broadcast %17 : vector<1x1xf32> to vector<1x128xf32>
    %19 = arith.addf %16, %18 : vector<1x128xf32>
    %cst_17 = arith.constant 0.000000e+00 : f32
    %20 = vector.broadcast %cst_17 : f32 to vector<1x128xf32>
    %21 = arith.maximumf %19, %20 : vector<1x128xf32>
    %22 = vector.shape_cast %21 : vector<1x128xf32> to vector<1x1x128xf32>
    %c0_18 = arith.constant 0 : index
    %c0_19 = arith.constant 0 : index
    %c0_20 = arith.constant 0 : index
    %23 = vector.load %arg8[%c0_18, %c0_19, %c0_20] : memref<1x1x128xf32, #tpu.memory_space<vmem>>, vector<1x1x128xf32>
    tpu.vector_store %arg8[%c0_18, %c0_19, %c0_20], %22 {strides = array<i32>} : memref<1x1x128xf32, #tpu.memory_space<vmem>>, vector<1x1x128xf32>,
    return
  }
  func.func @transform_0(%arg0: i32) -> (i32, i32) {
    %c0_i32 = arith.constant 0 : i32
    %c0_i32_0 = arith.constant 0 : i32
    return %arg0, %c0_i32 : i32, i32
  }
  func.func @transform_1(%arg0: i32) -> (i32, i32) {
    %c0_i32 = arith.constant 0 : i32
    %c0_i32_0 = arith.constant 0 : i32
    %c0_i32_1 = arith.constant 0 : i32
    return %c0_i32, %c0_i32_0 : i32, i32
  }
  func.func @transform_2(%arg0: i32) -> (i32, i32) {
    %c0_i32 = arith.constant 0 : i32
    %c0_i32_0 = arith.constant 0 : i32
    %c0_i32_1 = arith.constant 0 : i32
    return %c0_i32, %c0_i32_0 : i32, i32
  }
  func.func @transform_3(%arg0: i32) -> (i32, i32) {
    %c0_i32 = arith.constant 0 : i32
    %c0_i32_0 = arith.constant 0 : i32
    %c0_i32_1 = arith.constant 0 : i32
    return %c0_i32, %c0_i32_0 : i32, i32
  }
  func.func @transform_4(%arg0: i32) -> (i32, i32) {
    %c0_i32 = arith.constant 0 : i32
    %c0_i32_0 = arith.constant 0 : i32
    %c0_i32_1 = arith.constant 0 : i32
    return %c0_i32, %c0_i32_0 : i32, i32
  }
  func.func @transform_5(%arg0: i32) -> (i32, i32) {
    %c0_i32 = arith.constant 0 : i32
    %c0_i32_0 = arith.constant 0 : i32
    %c0_i32_1 = arith.constant 0 : i32
    return %c0_i32, %c0_i32_0 : i32, i32
  }
  func.func @transform_6(%arg0: i32) -> (i32, i32) {
    %c0_i32 = arith.constant 0 : i32
    %c0_i32_0 = arith.constant 0 : i32
    %c0_i32_1 = arith.constant 0 : i32
    return %c0_i32, %c0_i32_0 : i32, i32
  }
  func.func @transform_7(%arg0: i32) -> (i32, i32, i32) {
    %c0_i32 = arith.constant 0 : i32
    %c0_i32_0 = arith.constant 0 : i32
    %c0_i32_1 = arith.constant 0 : i32
    return %arg0, %c0_i32, %c0_i32_0 : i32, i32, i32
  }
}

</mosaic_0001>

<bundles_post_ra>
// kernel: tpu_custom_call.1
= control target key start
LH: loop header
LB: loop body
LE: loop exit
PB: predicated region body
PF: predicated region fallthrough
CT: control target
= control target key end

     0   :  { %s1034_s0 = inlined_call_operand.vmem [shape: f32[128,16], index: 0, kind: input, shape index: {}]   ;;  %s1035_s1 = inlined_call_operand.vmem [shape: f32[16,128], index: 1, kind: input, shape index: {}]   ;;  %s1036_s2 = inlined_call_operand.vmem [shape: f32[1,128], index: 2, kind: input, shape index: {}]   ;;  %s1037_s3 = inlined_call_operand.vmem [shape: f32[128,128], index: 3, kind: input, shape index: {}]   ;;  %s1038_s4 = inlined_call_operand.vmem [shape: f32[1,128], index: 4, kind: input, shape index: {}]   ;;  %s1039_s5 = inlined_call_operand.vmem [shape: f32[1,128], index: 5, kind: input, shape index: {}]   ;;  %s1040_s6 = inlined_call_operand.<no memory space> [shape: f32[1,1], index: 6, kind: input, shape index: {}]   ;;  %s1041_s7 = inlined_call_operand.hbm [shape: f32[1,1,128], index: 7, kind: output, shape index: {}]  }
   0x1   :  { %v12_v0 = vstv %s1040_s6 }
   0x2   :  { %13 = vst [vmem:[#allocation2] sm:$0x1] %v12_v0 }
   0x3   :  { %v45_v1 = vld [vmem:[%s1035_s1] sm:$0xff]  ;;  %v46_v2 = vld [vmem:[%s1035_s1 + $0x8] sm:$0xff]  ;;  %vm54_vm0 = vcmask 130048   ;;  %v31_v6 = vld [vmem:[%s1034_s0 + $0x10] sm:$0xff] }
   0x4   :  { %v29_v3 = vld [vmem:[%s1034_s0] sm:$0xff]  ;;  %v749_v4 = vpack.c.bf16 %v46_v2, %v45_v1  ;;  %v30_v5 = vld [vmem:[%s1034_s0 + $0x8] sm:$0xff]  ;;  %v266_v9 = vld [vmem:[%s1037_s3 + $0x10] sm:$0xff] }
   0x5   :  { %634 = vmatprep.mubr.msk.f32.mxu1 %vm54_vm0, %v29_v3  ;;  %v264_v7 = vld [vmem:[%s1037_s3] sm:$0xff]  ;;  %v265_v8 = vld [vmem:[%s1037_s3 + $0x8] sm:$0xff]  ;;  %v267_v11 = vld [vmem:[%s1037_s3 + $0x18] sm:$0xff] }
   0x6   :  { %750 = vmatprep.subr.bf16.mxu1 %v749_v4  ;;  %v753_v10 = vpack.c.bf16 %v265_v8, %v264_v7  ;;  %v32_v12 = vld [vmem:[%s1034_s0 + $0x18] sm:$0xff]  ;;  %v757_v13 = vpack.c.bf16 %v267_v11, %v266_v9  ;;  %v268_v14 = vld [vmem:[%s1037_s3 + $0x20] sm:$0xff]  ;;  %v269_v15 = vld [vmem:[%s1037_s3 + $0x28] sm:$0xff] }
   0x7   :  { %752 = vmatpush3.bf16.msra.mxu1 %v749_v4  ;;  %v33_v16 = vld [vmem:[%s1034_s0 + $0x20] sm:$0xff] }
   0x8   :  { %754 = vmatprep.subr.bf16.mxu1 %v753_v10 }
   0xa   :  { %635 = vmatmul.mubr.msk.f32.vlgmr.msra.gmra.mrb[0].mxu1 %vm54_vm0, %v30_v5 }
   0xb   :  { %637 = vmatprep.mubr.msk.f32.mxu1 %vm54_vm0, %v31_v6  ;;  %756 = vmatpush3.bf16.msra.mxu1 %v753_v10 }
   0xc   :  { %14 = vsyncpa [#allocation4], 0  ;;  %758 = vmatprep.subr.bf16.mxu1 %v757_v13  ;;  %v761_v17 = vpack.c.bf16 %v269_v15, %v268_v14  ;;  %v34_v18 = vld [vmem:[%s1034_s0 + $0x28] sm:$0xff]  ;;  %v270_v19 = vld [vmem:[%s1037_s3 + $0x30] sm:$0xff]  ;;  %vm840_vm1 = vmmov 0   ;;  %s843_s21 = smov [#allocation3]  }
   0xd   :  { %v271_v20 = vld [vmem:[%s1037_s3 + $0x38] sm:$0xff]  ;;  %v35_v21 = vld [vmem:[%s1034_s0 + $0x30] sm:$0xff]  ;;  %v272_v24 = vld [vmem:[%s1037_s3 + $0x40] sm:$0xff]  ;;  %s537_s22 = sshll.u32 %s843_s21, 4  ;;  %s538_s22 = int_to_ptr.vmem [resolvable:$true] %s537_s22 }
   0xe   :  { %638 = vmatmul.mubr.msk.f32.gmra.mrb[2].mxu1 %vm54_vm0, %v32_v12  ;;  %v765_v22 = vpack.c.bf16 %v271_v20, %v270_v19  ;;  %v36_v23 = vld [vmem:[%s1034_s0 + $0x38] sm:$0xff]  ;;  %v273_v25 = vld [vmem:[%s1037_s3 + $0x48] sm:$0xff]  ;;  %v37_v26 = vld [vmem:[%s1034_s0 + $0x40] sm:$0xff]  ;;  %s815_s23 = scalar_lea.vmem %s538_s22, 16  ;;  %s819_s24 = scalar_lea.vmem %s538_s22, 32 }
   0xf   :  { %640 = vmatprep.mubr.msk.f32.mxu1 %vm54_vm0, %v33_v16  ;;  %760 = vmatpush3.bf16.msra.mxu1 %v757_v13  ;;  %v769_v27 = vpack.c.bf16 %v273_v25, %v272_v24  ;;  %v38_v28 = vld [vmem:[%s1034_s0 + $0x48] sm:$0xff]  ;;  %v274_v29 = vld [vmem:[%s1037_s3 + $0x50] sm:$0xff]  ;;  %v275_v30 = vld [vmem:[%s1037_s3 + $0x58] sm:$0xff]  ;;  %p816_p0 = scmp.ne.s32.totalorder %s538_s22, %s815_s23  ;;  %p820_p1 = scmp.lt.s32.totalorder %s538_s22, %s538_s22 }
  0x10   :  { %762 = vmatprep.subr.bf16.mxu1 %v761_v17  ;;  %v39_v31 = vld [vmem:[%s1034_s0 + $0x50] sm:$0xff]  ;;  %v773_v32 = vpack.c.bf16 %v275_v30, %v274_v29  ;;  %v40_v33 = vld [vmem:[%s1034_s0 + $0x58] sm:$0xff]  ;;  %v276_v34 = vld [vmem:[%s1037_s3 + $0x60] sm:$0xff]  ;;  %v839_v29 = vmov 0.0|0.0   ;;  %v841_v30 = vmov 0.0   ;;  %p821_p2 = scmp.lt.s32.totalorder %s819_s24, %s815_s23 }
  0x11   :  { %v277_v35 = vld [vmem:[%s1037_s3 + $0x68] sm:$0xff]  ;;  %v41_v36 = vld [vmem:[%s1034_s0 + $0x60] sm:$0xff]  ;;  %v43_v39 = vld [vmem:[%s1034_s0 + $0x70] sm:$0xff]  ;;  %785 = vmatprep.subr.bf16.mxu0 %v839_v29  ;;  %746 = vmatprep.mubr.msk.f32.mxu0 %vm840_vm1, %v841_v30 }
  0x12   :  { %641 = vmatmul.mubr.msk.f32.gmra.mrb[4].mxu1 %vm54_vm0, %v34_v18  ;;  %v777_v37 = vpack.c.bf16 %v277_v35, %v276_v34  ;;  %v42_v38 = vld [vmem:[%s1034_s0 + $0x68] sm:$0xff]  ;;  %v44_v40 = vld [vmem:[%s1034_s0 + $0x78] sm:$0xff]  ;;  %v278_v41 = vld [vmem:[%s1037_s3 + $0x70] sm:$0xff]  ;;  %p822_p3 = por %p821_p2, %p820_p1 }
  0x13   :  { %643 = vmatprep.mubr.msk.f32.mxu1 %vm54_vm0, %v35_v21  ;;  %764 = vmatpush3.bf16.msra.mxu1 %v761_v17  ;;  %v279_v42 = vld [vmem:[%s1037_s3 + $0x78] sm:$0xff]  ;;  %v545_v44 = vld [vmem:[%s1036_s2] ss:$0 sm:$0xff] }
  0x14   :  { %766 = vmatprep.subr.bf16.mxu1 %v765_v22  ;;  %v781_v43 = vpack.c.bf16 %v279_v42, %v278_v41  ;;  %p823_p4 = pnand %p822_p3, %p816_p0 }
  0x16   :  { %644 = vmatmul.mubr.msk.f32.gmra.mrb[6].mxu1 %vm54_vm0, %v36_v23 }
  0x17   :  { %646 = vmatprep.mubr.msk.f32.mxu1 %vm54_vm0, %v37_v26  ;;  %768 = vmatpush3.bf16.msra.mxu1 %v765_v22 }
  0x18   :  { %770 = vmatprep.subr.bf16.mxu1 %v769_v27 }
  0x1a   :  { %647 = vmatmul.mubr.msk.f32.gmra.mrb[8].mxu1 %vm54_vm0, %v38_v28 }
  0x1b   :  { %649 = vmatprep.mubr.msk.f32.mxu1 %vm54_vm0, %v39_v31  ;;  %772 = vmatpush3.bf16.msra.mxu1 %v769_v27  ;;  %v449_v31 = vld [vmem:[#allocation2] sm:$0x1] }
  0x1c   :  { %774 = vmatprep.subr.bf16.mxu1 %v773_v32 }
  0x1e   :  { %650 = vmatmul.mubr.msk.f32.gmra.mrb[10].mxu1 %vm54_vm0, %v40_v33  ;;  %v562_v33 = vld [vmem:[%s1038_s4] ss:$0 sm:$0xff] }
  0x1f   :  { %652 = vmatprep.mubr.msk.f32.mxu1 %vm54_vm0, %v41_v36  ;;  %776 = vmatpush3.bf16.msra.mxu1 %v773_v32  ;;  %v842_v32 = vmov 0  }
  0x20   :  { %778 = vmatprep.subr.bf16.mxu1 %v777_v37  ;;  %814 = vset.pattern.permute.xlu0 %v842_v32 }
  0x21   :  { %452 = vperm.xlu0 %814, %v449_v31  }
  0x22   :  { %653 = vmatmul.mubr.msk.f32.gmra.mrb[12].mxu1 %vm54_vm0, %v42_v38 }
  0x23   :  { %655 = vmatprep.mubr.msk.f32.mxu1 %vm54_vm0, %v43_v39  ;;  %780 = vmatpush3.bf16.msra.mxu1 %v777_v37 }
  0x24   :  { %782 = vmatprep.subr.bf16.mxu1 %v781_v43 }
  0x26   :  { %656 = vmatmul.mubr.msk.f32.gmra.mrb[14].mxu1 %vm54_vm0, %v44_v40 }
  0x27   :  { %784 = vmatpush3.bf16.msra.mxu1 %v781_v43 }
  0xa0   :  { %v453_v31 = vpop.permute.xlu0 %452 }
  0xdd   :  { %v636_v45 = vpop.f32.mrb[0].mxu1 }
  0xde   :  { %v175_v46 = vadd.f32 %v636_v45, %v545_v44  ;;  %v169_v47 = vpop.f32.mrb[1].mxu1 }
  0xdf   :  { %v170_v48 = vadd.f32 %v545_v44, %v169_v47 }
  0xe0   :  { %v249_v51 = vmax.f32 %v175_v46, 0.0 }
  0xe1   :  { %v248_v49 = vmax.f32 %v170_v48, 0.0  ;;  %v639_v50 = vpop.f32.mrb[2].mxu1 }
  0xe2   :  { %v185_v52 = vadd.f32 %v639_v50, %v545_v44  ;;  %v179_v53 = vpop.f32.mrb[3].mxu1 }
  0xe3   :  { %v180_v54 = vadd.f32 %v545_v44, %v179_v53  ;;  %690 = vmatprep.mubr.f32.mxu1 %v248_v49 }
  0xe4   :  { %v251_v55 = vmax.f32 %v185_v52, 0.0  ;;  %691 = vmatmul.mubr.f32.vlgmr.msra.gmra.mrb[16].mxu1 %v249_v51 }
  0xe5   :  { %v250_v56 = vmax.f32 %v180_v54, 0.0  ;;  %v642_v57 = vpop.f32.mrb[4].mxu1 }
  0xe6   :  { %v195_v58 = vadd.f32 %v642_v57, %v545_v44  ;;  %v189_v59 = vpop.f32.mrb[5].mxu1 }
  0xe7   :  { %693 = vmatprep.mubr.f32.mxu1 %v250_v56  ;;  %v190_v60 = vadd.f32 %v545_v44, %v189_v59 }
  0xe8   :  { %694 = vmatmul.mubr.f32.gmra.mrb[18].mxu1 %v251_v55  ;;  %v253_v61 = vmax.f32 %v195_v58, 0.0 }
  0xe9   :  { %v252_v62 = vmax.f32 %v190_v60, 0.0  ;;  %v645_v63 = vpop.f32.mrb[6].mxu1 }
  0xea   :  { %v205_v0 = vadd.f32 %v645_v63, %v545_v44  ;;  %v199_v1 = vpop.f32.mrb[7].mxu1 }
  0xeb   :  { %696 = vmatprep.mubr.f32.mxu1 %v252_v62  ;;  %v200_v2 = vadd.f32 %v545_v44, %v199_v1 }
  0xec   :  { %697 = vmatmul.mubr.f32.gmra.mrb[20].mxu1 %v253_v61  ;;  %v255_v3 = vmax.f32 %v205_v0, 0.0 }
  0xed   :  { %v254_v4 = vmax.f32 %v200_v2, 0.0  ;;  %v648_v5 = vpop.f32.mrb[8].mxu1 }
  0xee   :  { %v215_v6 = vadd.f32 %v648_v5, %v545_v44  ;;  %v209_v7 = vpop.f32.mrb[9].mxu1 }
  0xef   :  { %699 = vmatprep.mubr.f32.mxu1 %v254_v4  ;;  %v210_v8 = vadd.f32 %v545_v44, %v209_v7 }
  0xf0   :  { %700 = vmatmul.mubr.f32.gmra.mrb[22].mxu1 %v255_v3  ;;  %v257_v9 = vmax.f32 %v215_v6, 0.0 }
  0xf1   :  { %v256_v10 = vmax.f32 %v210_v8, 0.0  ;;  %v651_v11 = vpop.f32.mrb[10].mxu1 }
  0xf2   :  { %v225_v12 = vadd.f32 %v651_v11, %v545_v44  ;;  %v219_v13 = vpop.f32.mrb[11].mxu1 }
  0xf3   :  { %702 = vmatprep.mubr.f32.mxu1 %v256_v10  ;;  %v220_v14 = vadd.f32 %v545_v44, %v219_v13 }
  0xf4   :  { %703 = vmatmul.mubr.f32.gmra.mrb[24].mxu1 %v257_v9  ;;  %v259_v15 = vmax.f32 %v225_v12, 0.0 }
  0xf5   :  { %v258_v16 = vmax.f32 %v220_v14, 0.0  ;;  %v654_v17 = vpop.f32.mrb[12].mxu1 }
  0xf6   :  { %v235_v18 = vadd.f32 %v654_v17, %v545_v44  ;;  %v229_v19 = vpop.f32.mrb[13].mxu1 }
  0xf7   :  { %705 = vmatprep.mubr.f32.mxu1 %v258_v16  ;;  %v230_v20 = vadd.f32 %v545_v44, %v229_v19 }
  0xf8   :  { %706 = vmatmul.mubr.f32.gmra.mrb[26].mxu1 %v259_v15  ;;  %v261_v21 = vmax.f32 %v235_v18, 0.0 }
  0xf9   :  { %v260_v22 = vmax.f32 %v230_v20, 0.0  ;;  %v657_v23 = vpop.f32.mrb[14].mxu1 }
  0xfa   :  { %v245_v24 = vadd.f32 %v657_v23, %v545_v44  ;;  %v239_v25 = vpop.f32.mrb[15].mxu1 }
  0xfb   :  { %708 = vmatprep.mubr.f32.mxu1 %v260_v22  ;;  %v240_v26 = vadd.f32 %v545_v44, %v239_v25 }
  0xfc   :  { %709 = vmatmul.mubr.f32.gmra.mrb[28].mxu1 %v261_v21  ;;  %v263_v27 = vmax.f32 %v245_v24, 0.0 }
  0xfd   :  { %v262_v28 = vmax.f32 %v240_v26, 0.0  ;;  %v448_v26 = vld [vmem:[%s1039_s5] sm:$0x1] }
  0xff   :  { %711 = vmatprep.mubr.f32.mxu1 %v262_v28 }
 0x100   :  { %712 = vmatmul.mubr.f32.gmra.mrb[30].mxu1 %v263_v27  ;;  %v455_v27 = vlaneseq }
 0x102   :  { %v456_v28 = vshrl.u32 %v455_v27, 7 }
 0x104   :  { %v457_v30 = vsub.s32 0, %v456_v28 }
 0x106   :  { %v458_v32 = vrot.slane %v453_v31, %v457_v30 }
 0x1b7   :  { %v692_v34 = vpop.f32.mrb[16].mxu1 }
 0x1b8   :  { %v359_v35 = vadd.f32 %v692_v34, %v562_v33  ;;  %v353_v36 = vpop.f32.mrb[17].mxu1 }
 0x1b9   :  { %v354_v37 = vadd.f32 %v562_v33, %v353_v36 }
 0x1ba   :  { %v433_v38 = vmax.f32 %v359_v35, 0.0 }
 0x1bb   :  { %v432_v39 = vmax.f32 %v354_v37, 0.0  ;;  %v695_v40 = vpop.f32.mrb[18].mxu1 }
 0x1bc   :  { %v369_v41 = vadd.f32 %v695_v40, %v562_v33  ;;  %v363_v42 = vpop.f32.mrb[19].mxu1 }
 0x1bd   :  { %v364_v43 = vadd.f32 %v562_v33, %v363_v42  ;;  %v786_v44 = vpack.c.bf16 %v433_v38, %v432_v39 }
 0x1be   :  { %v435_v45 = vmax.f32 %v369_v41, 0.0 }
 0x1bf   :  { %v434_v46 = vmax.f32 %v364_v43, 0.0  ;;  %787 = vmatpush3.bf16.xpose.msra.mxu0 %v786_v44  ;;  %v698_v47 = vpop.f32.mrb[20].mxu1 }
 0x1c0   :  { %v379_v48 = vadd.f32 %v698_v47, %v562_v33  ;;  %v373_v49 = vpop.f32.mrb[21].mxu1  ;;  %788 = vmatprep.subr.bf16.mxu0 %v839_v29 }
 0x1c1   :  { %v789_v50 = vpack.c.bf16 %v435_v45, %v434_v46  ;;  %v374_v51 = vadd.f32 %v562_v33, %v373_v49 }
 0x1c2   :  { %v437_v52 = vmax.f32 %v379_v48, 0.0 }
 0x1c3   :  { %v436_v53 = vmax.f32 %v374_v51, 0.0  ;;  %v701_v54 = vpop.f32.mrb[22].mxu1 }
 0x1c4   :  { %v389_v55 = vadd.f32 %v701_v54, %v562_v33  ;;  %v383_v56 = vpop.f32.mrb[23].mxu1 }
 0x1c5   :  { %v792_v57 = vpack.c.bf16 %v437_v52, %v436_v53  ;;  %v384_v58 = vadd.f32 %v562_v33, %v383_v56 }
 0x1c6   :  { %v439_v59 = vmax.f32 %v389_v55, 0.0 }
 0x1c7   :  { %790 = vmatpush3.bf16.xpose.msra.mxu0 %v789_v50  ;;  %v438_v60 = vmax.f32 %v384_v58, 0.0  ;;  %v704_v61 = vpop.f32.mrb[24].mxu1 }
 0x1c8   :  { %791 = vmatprep.subr.bf16.mxu0 %v839_v29  ;;  %v399_v62 = vadd.f32 %v704_v61, %v562_v33  ;;  %v393_v63 = vpop.f32.mrb[25].mxu1 }
 0x1c9   :  { %v795_v0 = vpack.c.bf16 %v439_v59, %v438_v60  ;;  %v394_v1 = vadd.f32 %v562_v33, %v393_v63 }
 0x1ca   :  { %v441_v2 = vmax.f32 %v399_v62, 0.0 }
 0x1cb   :  { %v440_v3 = vmax.f32 %v394_v1, 0.0  ;;  %v707_v4 = vpop.f32.mrb[26].mxu1 }
 0x1cc   :  { %v409_v5 = vadd.f32 %v707_v4, %v562_v33  ;;  %v403_v6 = vpop.f32.mrb[27].mxu1 }
 0x1cd   :  { %v798_v7 = vpack.c.bf16 %v441_v2, %v440_v3  ;;  %v404_v8 = vadd.f32 %v562_v33, %v403_v6 }
 0x1ce   :  { %v443_v9 = vmax.f32 %v409_v5, 0.0 }
 0x1cf   :  { %793 = vmatpush3.bf16.xpose.msra.mxu0 %v792_v57  ;;  %v442_v10 = vmax.f32 %v404_v8, 0.0  ;;  %v710_v11 = vpop.f32.mrb[28].mxu1 }
 0x1d0   :  { %794 = vmatprep.subr.bf16.mxu0 %v839_v29  ;;  %v419_v12 = vadd.f32 %v710_v11, %v562_v33  ;;  %v413_v13 = vpop.f32.mrb[29].mxu1 }
 0x1d1   :  { %v801_v14 = vpack.c.bf16 %v443_v9, %v442_v10  ;;  %v414_v15 = vadd.f32 %v562_v33, %v413_v13 }
 0x1d2   :  { %v445_v16 = vmax.f32 %v419_v12, 0.0 }
 0x1d3   :  { %v444_v17 = vmax.f32 %v414_v15, 0.0  ;;  %v713_v18 = vpop.f32.mrb[30].mxu1 }
 0x1d4   :  { %v429_v19 = vadd.f32 %v713_v18, %v562_v33  ;;  %v423_v20 = vpop.f32.mrb[31].mxu1 }
 0x1d5   :  { %v804_v21 = vpack.c.bf16 %v445_v16, %v444_v17  ;;  %v424_v22 = vadd.f32 %v562_v33, %v423_v20 }
 0x1d6   :  { %v447_v23 = vmax.f32 %v429_v19, 0.0 }
 0x1d7   :  { %796 = vmatpush3.bf16.xpose.msra.mxu0 %v795_v0  ;;  %v446_v24 = vmax.f32 %v424_v22, 0.0 }
 0x1d8   :  { %797 = vmatprep.subr.bf16.mxu0 %v839_v29 }
 0x1d9   :  { %v807_v25 = vpack.c.bf16 %v447_v23, %v446_v24 }
 0x1df   :  { %799 = vmatpush3.bf16.xpose.msra.mxu0 %v798_v7 }
 0x1e0   :  { %800 = vmatprep.subr.bf16.mxu0 %v839_v29 }
 0x1e7   :  { %802 = vmatpush3.bf16.xpose.msra.mxu0 %v801_v14 }
 0x1e8   :  { %803 = vmatprep.subr.bf16.mxu0 %v839_v29 }
 0x1ef   :  { %805 = vmatpush3.bf16.xpose.msra.mxu0 %v804_v21 }
 0x1f0   :  { %806 = vmatprep.subr.bf16.mxu0 %v839_v29 }
 0x1f7   :  { %808 = vmatpush3.bf16.xpose.msra.mxu0 %v807_v25 }
 0x1fe   :  { %747 = vmatmul.mubr.f32.vlgmr.msra.gmra.mrb[0].mxu0 %v448_v26 }
 0x2d1   :  { %v525_v33 = vpop.f32.mrb[0].mxu0 }
 0x2d2   :  { %v526_v34 = vadd.f32 %v525_v33, %v458_v32  ;;  %v748_v35 = vpop.f32.mrb[1].mxu0 }
 0x2d4   :  { %v529_v36 = vmax.f32 %v526_v34, 0.0 }
 0x2d6   :  { %530 = vst [vmem:[#allocation3] sm:$0x1] %v529_v36 }
 0x2d7   :  { %826 = shalt.err (!%p823_p4)
}
 0x2d8   :  { %s827_s26 = scalar_lea.hbm %s1041_s7, 16 }
 0x2d9   :  { %p828_p5 = scmp.ne.s32.totalorder %s1041_s7, %s827_s26  ;;  %p831_p6 = scmp.lt.u32.totalorder %s827_s26, %s1041_s7 }
 0x2db   :  { %p833_p7 = pnand %p831_p6, %p828_p5 }
 0x2dd   :  { %836 = shalt.err (!%p833_p7)
}
 0x2de   :  { %540 = dma.vmem_to_hbm [thread:$0]  %s538_s22, 16, %s1041_s7, [#allocation4]  }
 0x2df   :  { %837 = dma.done.wait [#allocation4], 16  }
 0x2e0   :  { %838 = vsyncadd [#allocation4], 4294967280 }
 0x2e1   :  { %544 = vsyncpa [#allocation4], 1 }

</bundles_post_ra>
